<compile_context>
chip_gen: v7x
topology: tpu7x:2x2x1
jax: 0.10.0
libtpu: 0.0.40
codegen_flags: <defaults>
</compile_context>

<pallas_src>
import jax
import jax.numpy as jnp
from jax.experimental import pallas as pl
from jax.experimental.pallas import tpu as pltpu


def _round_up(x: int, m: int) -> int:
    return ((x + m - 1) // m) * m


def _fusion_kernel(t_ref, c_ref, wt_ref, wc_ref, b_ref, gamma_ref, beta_ref,
                   o_ref):
    """One batch tile: split-matmul projection + LayerNorm + ReLU.

    Rows beyond the real batch in a ragged last tile may hold garbage (and may
    produce NaN via rsqrt); LayerNorm is per-row and those rows are discarded
    on writeback, so this is intentional and harmless.
    """
    # Two MXU dots replace concat([t, c]) @ W  -- no cross-lane data movement.
    y = jnp.dot(t_ref[...], wt_ref[...], preferred_element_type=jnp.float32)
    y = y + jnp.dot(c_ref[...], wc_ref[...], preferred_element_type=jnp.float32)
    y = y + b_ref[...]                               # [TB, D], bias broadcasts

    # LayerNorm (eps=1e-5), two-pass variance for numerical robustness.
    mean = jnp.mean(y, axis=-1, keepdims=True)
    d = y - mean
    var = jnp.mean(d * d, axis=-1, keepdims=True)
    yn = d * jax.lax.rsqrt(var + 1e-5)
    out = yn * gamma_ref[...] + beta_ref[...]

    # ReLU (Dropout is identity in eval mode).
    o_ref[...] = jnp.maximum(out, 0.0).astype(o_ref.dtype)


def prepare_fusion_params(w, b, gamma, beta, t_dim: int):
    """One-time parameter prep (hoisted out of the forward call).

    Args:
      w:     [D, D] projection weight stored as [in_features, out_features]
             (i.e. PyTorch ``linear.weight.T``), D = t_dim + c_dim.
      b:     [1, D] projection bias.
      gamma: [1, D] LayerNorm weight.
      beta:  [1, D] LayerNorm bias.
      t_dim: transcriptomics feature width (split point of the input axis).

    Returns:
      (w_t, w_c, b, gamma, beta) with w split along the input axis so the
      kernel never has to concatenate t and c.
    """
    D = w.shape[0]
    assert w.shape == (D, D)
    w_t = jnp.asarray(w[:t_dim, :], jnp.float32)     # [t_dim, D]
    w_c = jnp.asarray(w[t_dim:, :], jnp.float32)     # [c_dim, D]
    return (w_t, w_c,
            jnp.asarray(b, jnp.float32),
            jnp.asarray(gamma, jnp.float32),
            jnp.asarray(beta, jnp.float32))


def feature_fusion_concat(t, c, params, *, block_b: int = 2048):
    """Pallas FeatureFusion ('concat' strategy, projection=True), eval mode.

    Args:
      t:       [B, t_dim] transcriptomics features (float32).
      c:       [B, c_dim] chemical features (float32).
      params:  output of prepare_fusion_params().
      block_b: target batch tile size (rows per grid step).  Sweepable; even
               at 8192 the double-buffered VMEM footprint stays well under the
               32 MiB budget on every generation (v7x's 64 MiB VMEM included).

    Returns:
      [B, D] float32 fused representation.
    """
    w_t, w_c, b, gamma, beta = params
    B, t_dim = t.shape
    _, c_dim = c.shape
    D = w_t.shape[1]
    assert w_t.shape == (t_dim, D) and w_c.shape == (c_dim, D)
    assert D == t_dim + c_dim

    # ---- batch tiling ------------------------------------------------------
    # Balance rows across grid steps (minimal ragged waste on the last tile)
    # instead of padding the batch.  For large B force >= 2 steps so the
    # "parallel" batch axis can shard across v7x's two TensorCores.
    n_steps = pl.cdiv(B, block_b)
    if B >= 1024:
        n_steps = max(n_steps, 2)
    TB = _round_up(pl.cdiv(B, n_steps), 8)           # sublane-aligned tile
    grid = (pl.cdiv(B, TB),)                         # ragged last block is OK

    # Advisory cost hint for XLA's scheduler (memory-bound custom call).
    cost = pl.CostEstimate(
        flops=2 * B * (t_dim + c_dim) * D,
        transcendentals=B,                            # one rsqrt per row
        bytes_accessed=4 * (B * (t_dim + c_dim + D) + (t_dim + c_dim) * D + 3 * D),
    )

    return pl.pallas_call(
        _fusion_kernel,
        out_shape=jax.ShapeDtypeStruct((B, D), jnp.float32),
        grid=grid,
        in_specs=[
            pl.BlockSpec((TB, t_dim), lambda i: (i, 0)),   # t: streamed per step
            pl.BlockSpec((TB, c_dim), lambda i: (i, 0)),   # c: streamed per step
            pl.BlockSpec((t_dim, D), lambda i: (0, 0)),    # w_t: VMEM-resident
            pl.BlockSpec((c_dim, D), lambda i: (0, 0)),    # w_c: VMEM-resident
            pl.BlockSpec((1, D), lambda i: (0, 0)),        # bias: resident
            pl.BlockSpec((1, D), lambda i: (0, 0)),        # gamma: resident
            pl.BlockSpec((1, D), lambda i: (0, 0)),        # beta: resident
        ],
        out_specs=pl.BlockSpec((TB, D), lambda i: (i, 0)),
        compiler_params=pltpu.CompilerParams(
            dimension_semantics=("parallel",),   # batch tiles independent (2 TCs on v7x)
            vmem_limit_bytes=32 * 1024 * 1024,   # explicit budget; safe on v7x's 64 MiB
        ),
        cost_estimate=cost,
    )(t, c, w_t, w_c, b, gamma, beta)


def _reference(t, c, w, b, gamma, beta):
    fused = jnp.concatenate([t, c], axis=-1)
    y = fused @ w + b
    mean = jnp.mean(y, axis=-1, keepdims=True)
    var = jnp.mean((y - mean) ** 2, axis=-1, keepdims=True)
    y = (y - mean) * jax.lax.rsqrt(var + 1e-5)
    y = y * gamma + beta
    return jnp.maximum(y, 0.0)


if __name__ == "__main__":
    t_dim, c_dim = 24, 40
    D = t_dim + c_dim  # output_dim for 'concat' = 64

    key = jax.random.PRNGKey(0)
    k_t, k_c, k_w, k_b, k_g, k_be, k_t2, k_c2, k_t3, k_c3 = jax.random.split(key, 10)

    # Deterministic synthetic parameters (shapes match nn.Linear(D, D) + nn.LayerNorm(D)).
    w = jax.random.normal(k_w, (D, D), jnp.float32) * 0.05      # [in, out]
    b = jax.random.normal(k_b, (1, D), jnp.float32) * 0.01
    gamma = 1.0 + 0.1 * jax.random.normal(k_g, (1, D), jnp.float32)
    beta = 0.1 * jax.random.normal(k_be, (1, D), jnp.float32)

    # One-time parameter prep (hoisted out of the per-call path).
    params = prepare_fusion_params(w, b, gamma, beta, t_dim)

    # --- small batch (single grid step, tile == batch) -----------------------
    B = 8
    t = jax.random.normal(k_t, (B, t_dim), jnp.float32)
    c = jax.random.normal(k_c, (B, c_dim), jnp.float32)

    out = jax.block_until_ready(feature_fusion_concat(t, c, params))
    ref = _reference(t, c, w, b, gamma, beta)
    assert out.shape == (B, D)
    assert jnp.allclose(out, ref, atol=1e-4, rtol=1e-4), "mismatch vs reference (B=8)"

    # --- non-multiple-of-8 batch (single ragged block) ------------------------
    B2 = 300
    t2 = jax.random.normal(k_t2, (B2, t_dim), jnp.float32)
    c2 = jax.random.normal(k_c2, (B2, c_dim), jnp.float32)

    out2 = jax.block_until_ready(feature_fusion_concat(t2, c2, params))
    ref2 = _reference(t2, c2, w, b, gamma, beta)
    assert out2.shape == (B2, D)
    assert jnp.allclose(out2, ref2, atol=1e-4, rtol=1e-4), "mismatch vs reference (B=300)"

    # --- multi-step grid (forced >= 2 steps, ragged last tile) ----------------
    B3 = 1100
    t3 = jax.random.normal(k_t3, (B3, t_dim), jnp.float32)
    c3 = jax.random.normal(k_c3, (B3, c_dim), jnp.float32)

    out3 = jax.block_until_ready(feature_fusion_concat(t3, c3, params))
    ref3 = _reference(t3, c3, w, b, gamma, beta)
    assert out3.shape == (B3, D)
    assert jnp.allclose(out3, ref3, atol=1e-4, rtol=1e-4), "mismatch vs reference (B=1100)"

    print("KERNEL_OK")
</pallas_src>

<mosaic_0001>
module attributes {stable_mosaic.version = 11 : i64} {
  func.func @_fusion_kernel(%arg0: i32, %arg1: memref<8x24xf32, #tpu.memory_space<vmem>>, %arg2: memref<8x40xf32, #tpu.memory_space<vmem>>, %arg3: memref<24x64xf32, #tpu.memory_space<vmem>>, %arg4: memref<40x64xf32, #tpu.memory_space<vmem>>, %arg5: memref<1x64xf32, #tpu.memory_space<vmem>>, %arg6: memref<1x64xf32, #tpu.memory_space<vmem>>, %arg7: memref<1x64xf32, #tpu.memory_space<vmem>>, %arg8: memref<8x64xf32, #tpu.memory_space<vmem>>) attributes {dimension_semantics = [#tpu.dimension_semantics<parallel>], iteration_bounds = array<i64: 1>, scalar_prefetch = 0 : i64, scratch_operands = 0 : i64, tpu.core_type = #tpu.core_type<tc>, window_params = [{transform_indices = @transform_0, window_bounds = array<i64: 8, 24>}, {transform_indices = @transform_1, window_bounds = array<i64: 8, 40>}, {pipeline_mode = #tpu.pipeline_mode<synchronous>, transform_indices = @transform_2, window_bounds = array<i64: 24, 64>}, {pipeline_mode = #tpu.pipeline_mode<synchronous>, transform_indices = @transform_3, window_bounds = array<i64: 40, 64>}, {pipeline_mode = #tpu.pipeline_mode<synchronous>, transform_indices = @transform_4, window_bounds = array<i64: 1, 64>}, {pipeline_mode = #tpu.pipeline_mode<synchronous>, transform_indices = @transform_5, window_bounds = array<i64: 1, 64>}, {pipeline_mode = #tpu.pipeline_mode<synchronous>, transform_indices = @transform_6, window_bounds = array<i64: 1, 64>}, {transform_indices = @transform_7, window_bounds = array<i64: 8, 64>}]} {
    %c0 = arith.constant 0 : index
    %c0_0 = arith.constant 0 : index
    %0 = vector.load %arg1[%c0, %c0_0] : memref<8x24xf32, #tpu.memory_space<vmem>>, vector<8x24xf32>
    %c0_1 = arith.constant 0 : index
    %c0_2 = arith.constant 0 : index
    %1 = vector.load %arg3[%c0_1, %c0_2] : memref<24x64xf32, #tpu.memory_space<vmem>>, vector<24x64xf32>
    %cst = arith.constant dense<0.000000e+00> : vector<8x64xf32>
    %2 = tpu.matmul %0, %1, %cst {dimension_numbers = #tpu.dot_dimension_numbers<[1], [0], [0], [1], [0, 0, 1, 1], [], []>} : vector<8x24xf32>, vector<24x64xf32>, vector<8x64xf32> -> vector<8x64xf32>
    %c0_3 = arith.constant 0 : index
    %c0_4 = arith.constant 0 : index
    %3 = vector.load %arg2[%c0_3, %c0_4] : memref<8x40xf32, #tpu.memory_space<vmem>>, vector<8x40xf32>
    %c0_5 = arith.constant 0 : index
    %c0_6 = arith.constant 0 : index
    %4 = vector.load %arg4[%c0_5, %c0_6] : memref<40x64xf32, #tpu.memory_space<vmem>>, vector<40x64xf32>
    %cst_7 = arith.constant dense<0.000000e+00> : vector<8x64xf32>
    %5 = tpu.matmul %3, %4, %cst_7 {dimension_numbers = #tpu.dot_dimension_numbers<[1], [0], [0], [1], [0, 0, 1, 1], [], []>} : vector<8x40xf32>, vector<40x64xf32>, vector<8x64xf32> -> vector<8x64xf32>
    %6 = arith.addf %2, %5 : vector<8x64xf32>
    %c0_8 = arith.constant 0 : index
    %c0_9 = arith.constant 0 : index
    %7 = vector.load %arg5[%c0_8, %c0_9] : memref<1x64xf32, #tpu.memory_space<vmem>>, vector<1x64xf32>
    %8 = vector.broadcast %7 : vector<1x64xf32> to vector<8x64xf32>
    %9 = arith.addf %6, %8 : vector<8x64xf32>
    %cst_10 = arith.constant dense<0.000000e+00> : vector<8xf32>
    %10 = vector.multi_reduction <add>, %9, %cst_10 [1] : vector<8x64xf32> to vector<8xf32>
    %11 = vector.shape_cast %10 : vector<8xf32> to vector<8x1xf32>
    %cst_11 = arith.constant 6.400000e+01 : f32
    %12 = vector.broadcast %cst_11 : f32 to vector<8x1xf32>
    %13 = arith.divf %11, %12 : vector<8x1xf32>
    %14 = vector.broadcast %13 : vector<8x1xf32> to vector<8x64xf32>
    %15 = arith.subf %9, %14 : vector<8x64xf32>
    %16 = arith.mulf %15, %15 : vector<8x64xf32>
    %cst_12 = arith.constant dense<0.000000e+00> : vector<8xf32>
    %17 = vector.multi_reduction <add>, %16, %cst_12 [1] : vector<8x64xf32> to vector<8xf32>
    %18 = vector.shape_cast %17 : vector<8xf32> to vector<8x1xf32>
    %cst_13 = arith.constant 6.400000e+01 : f32
    %19 = vector.broadcast %cst_13 : f32 to vector<8x1xf32>
    %20 = arith.divf %18, %19 : vector<8x1xf32>
    %cst_14 = arith.constant 9.99999974E-6 : f32
    %21 = vector.broadcast %cst_14 : f32 to vector<8x1xf32>
    %22 = arith.addf %20, %21 : vector<8x1xf32>
    %23 = math.rsqrt %22 : vector<8x1xf32>
    %24 = vector.broadcast %23 : vector<8x1xf32> to vector<8x64xf32>
    %25 = arith.mulf %15, %24 : vector<8x64xf32>
    %c0_15 = arith.constant 0 : index
    %c0_16 = arith.constant 0 : index
    %26 = vector.load %arg6[%c0_15, %c0_16] : memref<1x64xf32, #tpu.memory_space<vmem>>, vector<1x64xf32>
    %27 = vector.broadcast %26 : vector<1x64xf32> to vector<8x64xf32>
    %28 = arith.mulf %25, %27 : vector<8x64xf32>
    %c0_17 = arith.constant 0 : index
    %c0_18 = arith.constant 0 : index
    %29 = vector.load %arg7[%c0_17, %c0_18] : memref<1x64xf32, #tpu.memory_space<vmem>>, vector<1x64xf32>
    %30 = vector.broadcast %29 : vector<1x64xf32> to vector<8x64xf32>
    %31 = arith.addf %28, %30 : vector<8x64xf32>
    %cst_19 = arith.constant 0.000000e+00 : f32
    %32 = vector.broadcast %cst_19 : f32 to vector<8x64xf32>
    %33 = arith.maximumf %31, %32 : vector<8x64xf32>
    %c0_20 = arith.constant 0 : index
    %c0_21 = arith.constant 0 : index
    %34 = vector.load %arg8[%c0_20, %c0_21] : memref<8x64xf32, #tpu.memory_space<vmem>>, vector<8x64xf32>
    tpu.vector_store %arg8[%c0_20, %c0_21], %33 {strides = array<i32>} : memref<8x64xf32, #tpu.memory_space<vmem>>, vector<8x64xf32>,
    return
  }
  func.func @transform_0(%arg0: i32) -> (i32, i32) {
    %c0_i32 = arith.constant 0 : i32
    %c0_i32_0 = arith.constant 0 : i32
    return %arg0, %c0_i32 : i32, i32
  }
  func.func @transform_1(%arg0: i32) -> (i32, i32) {
    %c0_i32 = arith.constant 0 : i32
    %c0_i32_0 = arith.constant 0 : i32
    return %arg0, %c0_i32 : i32, i32
  }
  func.func @transform_2(%arg0: i32) -> (i32, i32) {
    %c0_i32 = arith.constant 0 : i32
    %c0_i32_0 = arith.constant 0 : i32
    %c0_i32_1 = arith.constant 0 : i32
    return %c0_i32, %c0_i32_0 : i32, i32
  }
  func.func @transform_3(%arg0: i32) -> (i32, i32) {
    %c0_i32 = arith.constant 0 : i32
    %c0_i32_0 = arith.constant 0 : i32
    %c0_i32_1 = arith.constant 0 : i32
    return %c0_i32, %c0_i32_0 : i32, i32
  }
  func.func @transform_4(%arg0: i32) -> (i32, i32) {
    %c0_i32 = arith.constant 0 : i32
    %c0_i32_0 = arith.constant 0 : i32
    %c0_i32_1 = arith.constant 0 : i32
    return %c0_i32, %c0_i32_0 : i32, i32
  }
  func.func @transform_5(%arg0: i32) -> (i32, i32) {
    %c0_i32 = arith.constant 0 : i32
    %c0_i32_0 = arith.constant 0 : i32
    %c0_i32_1 = arith.constant 0 : i32
    return %c0_i32, %c0_i32_0 : i32, i32
  }
  func.func @transform_6(%arg0: i32) -> (i32, i32) {
    %c0_i32 = arith.constant 0 : i32
    %c0_i32_0 = arith.constant 0 : i32
    %c0_i32_1 = arith.constant 0 : i32
    return %c0_i32, %c0_i32_0 : i32, i32
  }
  func.func @transform_7(%arg0: i32) -> (i32, i32) {
    %c0_i32 = arith.constant 0 : i32
    %c0_i32_0 = arith.constant 0 : i32
    return %arg0, %c0_i32 : i32, i32
  }
}

</mosaic_0001>

<bundles_post_ra>
// kernel: tpu_custom_call.1
= control target key start
LH: loop header
LB: loop body
LE: loop exit
PB: predicated region body
PF: predicated region fallthrough
CT: control target
= control target key end

     0   :  { %12 = vsyncpa [#allocation3], 0  ;;  %s592_s0 = inlined_call_operand.hbm [shape: f32[8,24], index: 0, kind: input, shape index: {}]   ;;  %s593_s1 = inlined_call_operand.hbm [shape: f32[8,40], index: 1, kind: input, shape index: {}]   ;;  %s594_s2 = inlined_call_operand.hbm [shape: f32[24,64], index: 2, kind: input, shape index: {}]   ;;  %s595_s3 = inlined_call_operand.hbm [shape: f32[40,64], index: 3, kind: input, shape index: {}]   ;;  %s596_s4 = inlined_call_operand.vmem [shape: f32[1,64], index: 4, kind: input, shape index: {}]   ;;  %s597_s5 = inlined_call_operand.vmem [shape: f32[1,64], index: 5, kind: input, shape index: {}]   ;;  %s598_s6 = inlined_call_operand.vmem [shape: f32[1,64], index: 6, kind: input, shape index: {}]   ;;  %s599_s7 = inlined_call_operand.hbm [shape: f32[8,64], index: 7, kind: output, shape index: {}]  }
   0x1   :  { %13 = vsyncpa [#allocation6], 0 }
   0x2   :  { %14 = vsyncpa [#allocation9], 0 }
   0x3   :  { %15 = vsyncpa [#allocation4], 0  ;;  %s470_s24 = smov [#allocation5]   ;;  %s471_s26 = smov [#allocation2]  }
   0x4   :  { %s32_s25 = sshll.u32 %s470_s24, 4  ;;  %s22_s27 = sshll.u32 %s471_s26, 4  ;;  %s33_s25 = int_to_ptr.vmem [resolvable:$true] %s32_s25  ;;  %s23_s27 = int_to_ptr.vmem [resolvable:$true] %s22_s27 }
   0x5   :  { %s352_s30 = scalar_lea.hbm %s593_s1, 128 }
   0x6   :  { %p353_p0 = scmp.ne.s32.totalorder %s593_s1, %s352_s30  ;;  %p356_p1 = scmp.lt.u32.totalorder %s352_s30, %s593_s1 }
   0x8   :  { %p358_p2 = pnand %p356_p1, %p353_p0 }
   0xa   :  { %361 = shalt.err (!%p358_p2)
}
   0xb   :  { %s362_s12 = scalar_lea.vmem %s33_s25, 128  ;;  %p367_p4 = scmp.lt.s32.totalorder %s33_s25, %s33_s25 }
   0xc   :  { %p363_p3 = scmp.ne.s32.totalorder %s33_s25, %s362_s12  ;;  %p368_p5 = scmp.lt.s32.totalorder %s362_s12, %s362_s12 }
   0xe   :  { %p369_p6 = por %p368_p5, %p367_p4 }
  0x10   :  { %p370_p7 = pnand %p369_p6, %p363_p3 }
  0x12   :  { %373 = shalt.err (!%p370_p7)
}
  0x13   :  { %35 = dma.hbm_to_vmem [thread:$0]  %s593_s1, 128, %s33_s25, [#allocation6]  }
  0x14   :  { %s374_s17 = scalar_lea.hbm %s592_s0, 128 }
  0x15   :  { %p375_p8 = scmp.ne.s32.totalorder %s592_s0, %s374_s17  ;;  %p378_p9 = scmp.lt.u32.totalorder %s374_s17, %s592_s0 }
  0x17   :  { %p380_p10 = pnand %p378_p9, %p375_p8 }
  0x19   :  { %383 = shalt.err (!%p380_p10)
}
  0x1a   :  { %s384_s22 = scalar_lea.vmem %s23_s27, 128  ;;  %p389_p12 = scmp.lt.s32.totalorder %s23_s27, %s23_s27 }
  0x1b   :  { %p385_p11 = scmp.ne.s32.totalorder %s23_s27, %s384_s22  ;;  %p390_p13 = scmp.lt.s32.totalorder %s384_s22, %s384_s22 }
  0x1d   :  { %p391_p0 = por %p390_p13, %p389_p12 }
  0x1f   :  { %p392_p1 = pnand %p391_p0, %p385_p11 }
  0x21   :  { %395 = shalt.err (!%p392_p1)
}
  0x22   :  { %25 = dma.hbm_to_vmem [thread:$0]  %s592_s0, 128, %s23_s27, [#allocation3]  }
  0x23   :  { %s472_s24 = smov [#allocation7]   ;;  %s396_s29 = scalar_lea.hbm %s594_s2, 384 }
  0x24   :  { %s41_s25 = sshll.u32 %s472_s24, 4  ;;  %p397_p2 = scmp.ne.s32.totalorder %s594_s2, %s396_s29  ;;  %s42_s25 = int_to_ptr.vmem [resolvable:$true] %s41_s25 }
  0x25   :  { %p400_p3 = scmp.lt.u32.totalorder %s396_s29, %s594_s2 }
  0x27   :  { %p402_p4 = pnand %p400_p3, %p397_p2 }
  0x29   :  { %405 = shalt.err (!%p402_p4)
}
  0x2a   :  { %s406_s11 = scalar_lea.vmem %s42_s25, 384  ;;  %p411_p6 = scmp.lt.s32.totalorder %s42_s25, %s42_s25 }
  0x2b   :  { %p407_p5 = scmp.ne.s32.totalorder %s42_s25, %s406_s11  ;;  %p412_p7 = scmp.lt.s32.totalorder %s406_s11, %s406_s11 }
  0x2d   :  { %p413_p8 = por %p412_p7, %p411_p6 }
  0x2f   :  { %p414_p9 = pnand %p413_p8, %p407_p5 }
  0x31   :  { %417 = shalt.err (!%p414_p9)
}
  0x32   :  { %s473_s0 = smov 128   ;;  %s474_s27 = smov 8  }
  0x33   :  { %47 = dma.hbm_to_vmem [thread:$0]  %s594_s2, 384, %s42_s25, [#allocation6], %s473_s0, %s473_s0, %s474_s27  }
  0x34   :  { %s475_s14 = smov [#allocation8]   ;;  %s418_s18 = scalar_lea.hbm %s595_s3, 640 }
  0x35   :  { %s53_s15 = sshll.u32 %s475_s14, 4  ;;  %p419_p10 = scmp.ne.s32.totalorder %s595_s3, %s418_s18  ;;  %s54_s15 = int_to_ptr.vmem [resolvable:$true] %s53_s15 }
  0x36   :  { %p422_p11 = scmp.lt.u32.totalorder %s418_s18, %s595_s3 }
  0x38   :  { %p424_p12 = pnand %p422_p11, %p419_p10 }
  0x3a   :  { %427 = shalt.err (!%p424_p12)
}
  0x3b   :  { %s428_s1 = scalar_lea.vmem %s54_s15, 640  ;;  %p433_p0 = scmp.lt.s32.totalorder %s54_s15, %s54_s15 }
  0x3c   :  { %p429_p13 = scmp.ne.s32.totalorder %s54_s15, %s428_s1  ;;  %p434_p1 = scmp.lt.s32.totalorder %s428_s1, %s428_s1 }
  0x3e   :  { %p435_p2 = por %p434_p1, %p433_p0 }
  0x40   :  { %p436_p3 = pnand %p435_p2, %p429_p13 }
  0x42   :  { %439 = shalt.err (!%p436_p3)
}
  0x43   :  { %59 = dma.hbm_to_vmem [thread:$0]  %s595_s3, 640, %s54_s15, [#allocation9], %s473_s0, %s473_s0, %s474_s27  }
  0x44   :  { %462 = dma.done.wait [#allocation3], 128  }
  0x45   :  { %463 = vsyncadd [#allocation3], 4294967168 }
  0x46   :  { %464 = dma.done.wait [#allocation6], 512  }
  0x47   :  { %465 = vsyncadd [#allocation6], 4294966784 }
  0x48   :  { %466 = dma.done.wait [#allocation9], 640  }
  0x49   :  { %467 = vsyncadd [#allocation9], 4294966656  ;;  %v476_v0 = vmov 0.0|0.0   ;;  %vm477_vm0 = vmmov 0   ;;  %v478_v1 = vmov 0.0   ;;  %v83_v2 = vld [vmem:[#allocation8] sm:$0xff] }
  0x4a   :  { %331 = vmatprep.subr.bf16.mxu0 %v476_v0  ;;  %337 = vmatprep.subr.bf16.mxu1 %v476_v0  ;;  %v84_v3 = vld [vmem:[#allocation8 + $0x8] sm:$0xff]  ;;  %v80_v6 = vld [vmem:[#allocation7 + $0x8] sm:$0xff]  ;;  %v86_v8 = vld [vmem:[#allocation8 + $0x18] sm:$0xff]  ;;  %vm162_vm1 = vcmask 195584   ;;  %vm88_vm2 = vcmask 326656   ;;  %vm244_vm3 = vcmask 523264  }
  0x4b   :  { %328 = vmatprep.mubr.msk.f32.mxu1 %vm477_vm0, %v478_v1  ;;  %319 = vmatprep.mubr.msk.f32.mxu0 %vm477_vm0, %v478_v1  ;;  %v79_v4 = vld [vmem:[#allocation7] sm:$0xff]  ;;  %v332_v5 = vpack.c.bf16 %v84_v3, %v83_v2  ;;  %v85_v7 = vld [vmem:[#allocation8 + $0x10] sm:$0xff]  ;;  %v81_v11 = vld [vmem:[#allocation7 + $0x10] sm:$0xff]  ;;  %s479_s29 = smov [#allocation10]  }
  0x4c   :  { %v338_v9 = vpack.c.bf16 %v80_v6, %v79_v4  ;;  %v335_v10 = vpack.c.bf16 %v86_v8, %v85_v7  ;;  %v78_v12 = vld [vmem:[#allocation2] sm:$0xff]  ;;  %v87_v13 = vld [vmem:[#allocation8 + $0x20] sm:$0xff]  ;;  %s283_s30 = sshll.u32 %s479_s29, 4  ;;  %s284_s30 = int_to_ptr.vmem [resolvable:$true] %s283_s30 }
  0x4d   :  { %333 = vmatpush3.bf16.msra.mxu0 %v332_v5  ;;  %v82_v14 = vld [vmem:[#allocation5] sm:$0xff]  ;;  %v296_v18 = vld [vmem:[%s596_s4] ss:$0 sm:$0xff]  ;;  %s440_s8 = scalar_lea.vmem %s284_s30, 128  ;;  %p445_p5 = scmp.lt.s32.totalorder %s284_s30, %s284_s30 }
  0x4e   :  { %334 = vmatprep.subr.bf16.mxu0 %v476_v0  ;;  %339 = vmatpush3.bf16.msra.mxu1 %v338_v9  ;;  %v297_v32 = vld [vmem:[%s597_s5] ss:$0 sm:$0xff]  ;;  %p441_p4 = scmp.ne.s32.totalorder %s284_s30, %s440_s8  ;;  %p446_p6 = scmp.lt.s32.totalorder %s440_s8, %s440_s8 }
  0x4f   :  { %326 = vmatprep.subr.mxu1 %v478_v1  ;;  %v298_v34 = vld [vmem:[%s598_s6] ss:$0 sm:$0xff] }
  0x50   :  { %p447_p7 = por %p446_p6, %p445_p5 }
  0x51   :  { %336 = vmatpush3.bf16.msra.mxu0 %v335_v10 }
  0x52   :  { %317 = vmatprep.subr.mxu0 %v478_v1  ;;  %327 = vmatpush3.msra.mxu1 %v81_v11  ;;  %p448_p8 = pnand %p447_p7, %p441_p4 }
  0x53   :  { %329 = vmatmul.mubr.msk.f32.vlgmr.msra.gmra.mrb[0].mxu1 %vm162_vm1, %v78_v12 }
  0x55   :  { %318 = vmatpush3.msra.mxu0 %v87_v13 }
  0x56   :  { %320 = vmatmul.mubr.msk.f32.vlgmr.msra.gmra.mrb[0].mxu0 %vm88_vm2, %v82_v14 }
 0x126   :  { %v232_v15 = vpop.f32.mrb[0].mxu1 }
 0x127   :  { %v330_v16 = vpop.f32.mrb[1].mxu1 }
 0x129   :  { %v158_v17 = vpop.f32.mrb[0].mxu0 }
 0x12a   :  { %v233_v19 = vadd.f32 %v232_v15, %v158_v17  ;;  %v321_v20 = vpop.f32.mrb[1].mxu0 }
 0x12c   :  { %v243_v21 = vadd.f32 %v296_v18, %v233_v19 }
 0x12e   :  { %v245_v22 = vsel %vm244_vm3, %v243_v21, 0.0 }
 0x12f   :  { %246 = vadd.xlane.f32.xlu0 %v245_v22 }
 0x1bc   :  { %v247_v23 = vpop.xlane.xlu0 %246 }
 0x1bd   :  { %v249_v24 = vmul.f32 0.015625, %v247_v23 }
 0x1bf   :  { %v250_v25 = vsub.f32 %v243_v21, %v249_v24 }
 0x1c1   :  { %v251_v26 = vmul.f32 %v250_v25, %v250_v25 }
 0x1c3   :  { %v252_v27 = vsel %vm244_vm3, %v251_v26, 0.0 }
 0x1c4   :  { %253 = vadd.xlane.f32.xlu0 %v252_v27 }
 0x251   :  { %v254_v28 = vpop.xlane.xlu0 %253 }
 0x252   :  { %v255_v29 = vmul.f32 0.015625, %v254_v28 }
 0x254   :  { %v256_v30 = vadd.f32 1e-05, %v255_v29 }
 0x256   :  { %350 = vrsqrt.f32 %v256_v30 }
 0x260   :  { %v351_v31 = vpop.eup %350 }
 0x261   :  { %v258_v33 = vmul.f32 %v351_v31, %v250_v25 }
 0x263   :  { %v266_v35 = vmul.f32 %v297_v32, %v258_v33 }
 0x265   :  { %v274_v36 = vadd.f32 %v298_v34, %v266_v35 }
 0x267   :  { %v275_v37 = vmax.f32 %v274_v36, 0.0 }
 0x269   :  { %276 = vst.msk [vmem:[#allocation10] sm:$0xff] %vm244_vm3, %v275_v37 }
 0x26a   :  { %451 = shalt.err (!%p448_p8)
}
 0x26b   :  { %s452_s10 = scalar_lea.hbm %s599_s7, 128 }
 0x26c   :  { %p453_p9 = scmp.ne.s32.totalorder %s599_s7, %s452_s10  ;;  %p456_p10 = scmp.lt.u32.totalorder %s452_s10, %s599_s7 }
 0x26e   :  { %p458_p11 = pnand %p456_p10, %p453_p9 }
 0x270   :  { %461 = shalt.err (!%p458_p11)
}
 0x271   :  { %286 = dma.vmem_to_hbm [thread:$0]  %s284_s30, 128, %s599_s7, [#allocation4]  }
 0x272   :  { %468 = dma.done.wait [#allocation4], 128  }
 0x273   :  { %469 = vsyncadd [#allocation4], 4294967168 }
 0x274   :  { %290 = vsyncpa [#allocation3], 1 }
 0x275   :  { %291 = vsyncpa [#allocation6], 1 }
 0x276   :  { %292 = vsyncpa [#allocation9], 1 }
 0x277   :  { %293 = vsyncpa [#allocation4], 1 }

</bundles_post_ra>
